<compile_context>
chip_gen: v7x
topology: tpu7x:2x2x1
jax: 0.10.0
libtpu: 0.0.40
codegen_flags: <defaults>
</compile_context>

<pallas_src>
import jax
import jax.numpy as jnp
from jax.experimental import pallas as pl
from jax.experimental.pallas import tpu as pltpu


def pack_weights(w_oihw):
    """(Cout, Cin, 3, 3) -> (9*Cout, Cin); row (3*kh+kw)*Cout + co holds w[co, :, kh, kw].

    Weights are static in the module, so this runs once (hoisted out of the hot path).
    """
    cout, cin, kh, kw = w_oihw.shape
    return jnp.transpose(w_oihw, (2, 3, 0, 1)).reshape(kh * kw * cout, cin)


def relu_conv2d_packed(x_nchw, w_packed):
    """Fused ReLU + 3x3 'same' conv (stride 1, no bias).  NCHW in, NCHW out."""
    N, Cin, H, W = x_nchw.shape
    Cout = w_packed.shape[0] // 9
    HW = H * W

    # Free bitcast: flatten spatial onto the lane axis (stride = W).
    x_flat = x_nchw.reshape(N, Cin, HW)
    # Column index of each flattened spatial position (constant-folded under jit).
    col = (jnp.arange(HW, dtype=jnp.int32) % W).reshape(1, HW)

    def kernel(x_ref, w_ref, col_ref, o_ref):
        # x_ref: (1, Cin, HW); w_ref: (9*Cout, Cin); col_ref: (1, HW); o_ref: (1, Cout, HW)
        x = jnp.maximum(x_ref[0], 0.0)                                   # fused ReLU
        # One wide MXU matmul: all 9 taps' (Cout, HW) responses in a single pass.
        r = jnp.dot(w_ref[...], x, preferred_element_type=jnp.float32)  # (9*Cout, HW)
        col_idx = col_ref[...]                                           # (1, HW) int32

        def shift(a, d):
            # b[:, s] = a[:, s + d], zero-filled (no wrap); static lane-axis shift.
            if d == 0:
                return a
            z = jnp.zeros((a.shape[0], abs(d)), a.dtype)
            if d > 0:
                return jnp.concatenate([a[:, d:], z], axis=1)
            return jnp.concatenate([z, a[:, :d]], axis=1)

        acc = jnp.zeros((Cout, HW), jnp.float32)
        for kw in range(3):
            g = None
            for kh in range(3):
                t = 3 * kh + kw
                d = W * (kh - 1) + (kw - 1)
                s = shift(r[t * Cout:(t + 1) * Cout, :], d)   # sublane-aligned slice
                g = s if g is None else g + s
            # Column-boundary masks; row boundaries are already handled by the zero fill.
            if kw == 0:
                g = jnp.where(col_idx >= 1, g, 0.0)
            elif kw == 2:
                g = jnp.where(col_idx <= W - 2, g, 0.0)
            acc = acc + g

        o_ref[...] = acc[None].astype(o_ref.dtype)

    out_flat = pl.pallas_call(
        kernel,
        out_shape=jax.ShapeDtypeStruct((N, Cout, HW), x_nchw.dtype),
        grid=(N,),
        in_specs=[
            pl.BlockSpec((1, Cin, HW), lambda n: (n, 0, 0)),
            pl.BlockSpec(w_packed.shape, lambda n: (0, 0)),
            pl.BlockSpec((1, HW), lambda n: (0, 0)),
        ],
        out_specs=pl.BlockSpec((1, Cout, HW), lambda n: (n, 0, 0)),
        compiler_params=pltpu.CompilerParams(
            dimension_semantics=("parallel",)),
    )(x_flat, w_packed, col)

    return out_flat.reshape(N, Cout, H, W)   # free bitcast back to NCHW


def relu_conv2d(x_nchw, w_oihw):
    """Convenience wrapper matching the PyTorch module signature (packs weights inline)."""
    return relu_conv2d_packed(x_nchw, pack_weights(w_oihw))


if __name__ == "__main__":
    key = jax.random.PRNGKey(0)
    kx, kw_key = jax.random.split(key)

    # Shapes implied by the module: input (1, 128, 14, 14), weight (32, 128, 3, 3).
    x = jax.random.normal(kx, (1, 128, 14, 14), dtype=jnp.float32)
    w = jax.random.normal(kw_key, (32, 128, 3, 3), dtype=jnp.float32) * 0.05

    # One-time weight packing, hoisted out of the per-call path.
    w_packed = jax.block_until_ready(pack_weights(w))

    fwd = jax.jit(relu_conv2d_packed)
    out = jax.block_until_ready(fwd(x, w_packed))

    # Reference: ReLU + conv with XLA (NCHW / OIHW), f32.
    ref = jax.lax.conv_general_dilated(
        jnp.maximum(x, 0.0), w, window_strides=(1, 1),
        padding=((1, 1), (1, 1)),
        dimension_numbers=("NCHW", "OIHW", "NCHW"))

    assert out.shape == (1, 32, 14, 14)
    assert jnp.allclose(out, ref, atol=1e-3, rtol=1e-3), "mismatch vs reference"
    print("KERNEL_OK")
</pallas_src>

<mosaic_0001>
module attributes {stable_mosaic.version = 11 : i64} {
  func.func @kernel(%arg0: i32, %arg1: memref<1x128x196xf32, #tpu.memory_space<vmem>>, %arg2: memref<288x128xf32, #tpu.memory_space<vmem>>, %arg3: memref<1x196xi32, #tpu.memory_space<vmem>>, %arg4: memref<1x32x196xf32, #tpu.memory_space<vmem>>) attributes {dimension_semantics = [#tpu.dimension_semantics<parallel>], iteration_bounds = array<i64: 1>, scalar_prefetch = 0 : i64, scratch_operands = 0 : i64, tpu.core_type = #tpu.core_type<tc>, window_params = [{transform_indices = @transform_0, window_bounds = array<i64: 1, 128, 196>}, {pipeline_mode = #tpu.pipeline_mode<synchronous>, transform_indices = @transform_1, window_bounds = array<i64: 288, 128>}, {pipeline_mode = #tpu.pipeline_mode<synchronous>, transform_indices = @transform_2, window_bounds = array<i64: 1, 196>}, {transform_indices = @transform_3, window_bounds = array<i64: 1, 32, 196>}]} {
    %c0 = arith.constant 0 : index
    %c0_0 = arith.constant 0 : index
    %c0_1 = arith.constant 0 : index
    %0 = vector.load %arg1[%c0, %c0_0, %c0_1] : memref<1x128x196xf32, #tpu.memory_space<vmem>>, vector<1x128x196xf32>
    %1 = vector.shape_cast %0 : vector<1x128x196xf32> to vector<128x196xf32>
    %cst = arith.constant 0.000000e+00 : f32
    %2 = vector.broadcast %cst : f32 to vector<128x196xf32>
    %3 = arith.maximumf %1, %2 : vector<128x196xf32>
    %c0_2 = arith.constant 0 : index
    %c0_3 = arith.constant 0 : index
    %4 = vector.load %arg2[%c0_2, %c0_3] : memref<288x128xf32, #tpu.memory_space<vmem>>, vector<288x128xf32>
    %cst_4 = arith.constant dense<0.000000e+00> : vector<288x196xf32>
    %5 = tpu.matmul %4, %3, %cst_4 {dimension_numbers = #tpu.dot_dimension_numbers<[1], [0], [0], [1], [0, 0, 1, 1], [], []>} : vector<288x128xf32>, vector<128x196xf32>, vector<288x196xf32> -> vector<288x196xf32>
    %c0_5 = arith.constant 0 : index
    %c0_6 = arith.constant 0 : index
    %6 = vector.load %arg3[%c0_5, %c0_6] : memref<1x196xi32, #tpu.memory_space<vmem>>, vector<1x196xi32>
    %cst_7 = arith.constant 0.000000e+00 : f32
    %7 = vector.broadcast %cst_7 : f32 to vector<32x196xf32>
    %8 = vector.extract_strided_slice %5 {offsets = [0, 0], sizes = [32, 196], strides = [1, 1]} : vector<288x196xf32> to vector<32x196xf32>
    %cst_8 = arith.constant 0.000000e+00 : f32
    %9 = vector.broadcast %cst_8 : f32 to vector<32x15xf32>
    %10 = vector.extract_strided_slice %8 {offsets = [0, 0], sizes = [32, 181], strides = [1, 1]} : vector<32x196xf32> to vector<32x181xf32>
    %11 = tpu.concatenate %9, %10 in 1 : vector<32x15xf32>, vector<32x181xf32> -> vector<32x196xf32>
    %12 = vector.extract_strided_slice %5 {offsets = [96, 0], sizes = [32, 196], strides = [1, 1]} : vector<288x196xf32> to vector<32x196xf32>
    %cst_9 = arith.constant 0.000000e+00 : f32
    %13 = vector.broadcast %cst_9 : f32 to vector<32x1xf32>
    %14 = vector.extract_strided_slice %12 {offsets = [0, 0], sizes = [32, 195], strides = [1, 1]} : vector<32x196xf32> to vector<32x195xf32>
    %15 = tpu.concatenate %13, %14 in 1 : vector<32x1xf32>, vector<32x195xf32> -> vector<32x196xf32>
    %16 = arith.addf %11, %15 : vector<32x196xf32>
    %17 = vector.extract_strided_slice %5 {offsets = [192, 0], sizes = [32, 196], strides = [1, 1]} : vector<288x196xf32> to vector<32x196xf32>
    %cst_10 = arith.constant 0.000000e+00 : f32
    %18 = vector.broadcast %cst_10 : f32 to vector<32x13xf32>
    %19 = vector.extract_strided_slice %17 {offsets = [0, 13], sizes = [32, 183], strides = [1, 1]} : vector<32x196xf32> to vector<32x183xf32>
    %20 = tpu.concatenate %19, %18 in 1 : vector<32x183xf32>, vector<32x13xf32> -> vector<32x196xf32>
    %21 = arith.addf %16, %20 : vector<32x196xf32>
    %c1_i32 = arith.constant 1 : i32
    %22 = vector.broadcast %c1_i32 : i32 to vector<1x196xi32>
    %23 = arith.cmpi sge, %6, %22 : vector<1x196xi32>
    %cst_11 = arith.constant 0.000000e+00 : f32
    %24 = vector.shape_cast %23 : vector<1x196xi1> to vector<1x196xi1>
    %25 = vector.broadcast %24 : vector<1x196xi1> to vector<32x196xi1>
    %26 = vector.broadcast %cst_11 : f32 to vector<32x196xf32>
    %27 = arith.select %25, %21, %26 : vector<32x196xi1>, vector<32x196xf32>
    %28 = arith.addf %7, %27 : vector<32x196xf32>
    %29 = vector.extract_strided_slice %5 {offsets = [32, 0], sizes = [32, 196], strides = [1, 1]} : vector<288x196xf32> to vector<32x196xf32>
    %cst_12 = arith.constant 0.000000e+00 : f32
    %30 = vector.broadcast %cst_12 : f32 to vector<32x14xf32>
    %31 = vector.extract_strided_slice %29 {offsets = [0, 0], sizes = [32, 182], strides = [1, 1]} : vector<32x196xf32> to vector<32x182xf32>
    %32 = tpu.concatenate %30, %31 in 1 : vector<32x14xf32>, vector<32x182xf32> -> vector<32x196xf32>
    %33 = vector.extract_strided_slice %5 {offsets = [128, 0], sizes = [32, 196], strides = [1, 1]} : vector<288x196xf32> to vector<32x196xf32>
    %34 = arith.addf %32, %33 : vector<32x196xf32>
    %35 = vector.extract_strided_slice %5 {offsets = [224, 0], sizes = [32, 196], strides = [1, 1]} : vector<288x196xf32> to vector<32x196xf32>
    %cst_13 = arith.constant 0.000000e+00 : f32
    %36 = vector.broadcast %cst_13 : f32 to vector<32x14xf32>
    %37 = vector.extract_strided_slice %35 {offsets = [0, 14], sizes = [32, 182], strides = [1, 1]} : vector<32x196xf32> to vector<32x182xf32>
    %38 = tpu.concatenate %37, %36 in 1 : vector<32x182xf32>, vector<32x14xf32> -> vector<32x196xf32>
    %39 = arith.addf %34, %38 : vector<32x196xf32>
    %40 = arith.addf %28, %39 : vector<32x196xf32>
    %41 = vector.extract_strided_slice %5 {offsets = [64, 0], sizes = [32, 196], strides = [1, 1]} : vector<288x196xf32> to vector<32x196xf32>
    %cst_14 = arith.constant 0.000000e+00 : f32
    %42 = vector.broadcast %cst_14 : f32 to vector<32x13xf32>
    %43 = vector.extract_strided_slice %41 {offsets = [0, 0], sizes = [32, 183], strides = [1, 1]} : vector<32x196xf32> to vector<32x183xf32>
    %44 = tpu.concatenate %42, %43 in 1 : vector<32x13xf32>, vector<32x183xf32> -> vector<32x196xf32>
    %45 = vector.extract_strided_slice %5 {offsets = [160, 0], sizes = [32, 196], strides = [1, 1]} : vector<288x196xf32> to vector<32x196xf32>
    %cst_15 = arith.constant 0.000000e+00 : f32
    %46 = vector.broadcast %cst_15 : f32 to vector<32x1xf32>
    %47 = vector.extract_strided_slice %45 {offsets = [0, 1], sizes = [32, 195], strides = [1, 1]} : vector<32x196xf32> to vector<32x195xf32>
    %48 = tpu.concatenate %47, %46 in 1 : vector<32x195xf32>, vector<32x1xf32> -> vector<32x196xf32>
    %49 = arith.addf %44, %48 : vector<32x196xf32>
    %50 = vector.extract_strided_slice %5 {offsets = [256, 0], sizes = [32, 196], strides = [1, 1]} : vector<288x196xf32> to vector<32x196xf32>
    %cst_16 = arith.constant 0.000000e+00 : f32
    %51 = vector.broadcast %cst_16 : f32 to vector<32x15xf32>
    %52 = vector.extract_strided_slice %50 {offsets = [0, 15], sizes = [32, 181], strides = [1, 1]} : vector<32x196xf32> to vector<32x181xf32>
    %53 = tpu.concatenate %52, %51 in 1 : vector<32x181xf32>, vector<32x15xf32> -> vector<32x196xf32>
    %54 = arith.addf %49, %53 : vector<32x196xf32>
    %c12_i32 = arith.constant 12 : i32
    %55 = vector.broadcast %c12_i32 : i32 to vector<1x196xi32>
    %56 = arith.cmpi sle, %6, %55 : vector<1x196xi32>
    %cst_17 = arith.constant 0.000000e+00 : f32
    %57 = vector.shape_cast %56 : vector<1x196xi1> to vector<1x196xi1>
    %58 = vector.broadcast %57 : vector<1x196xi1> to vector<32x196xi1>
    %59 = vector.broadcast %cst_17 : f32 to vector<32x196xf32>
    %60 = arith.select %58, %54, %59 : vector<32x196xi1>, vector<32x196xf32>
    %61 = arith.addf %40, %60 : vector<32x196xf32>
    %62 = vector.shape_cast %61 : vector<32x196xf32> to vector<1x32x196xf32>
    %c0_18 = arith.constant 0 : index
    %c0_19 = arith.constant 0 : index
    %c0_20 = arith.constant 0 : index
    %63 = vector.load %arg4[%c0_18, %c0_19, %c0_20] : memref<1x32x196xf32, #tpu.memory_space<vmem>>, vector<1x32x196xf32>
    tpu.vector_store %arg4[%c0_18, %c0_19, %c0_20], %62 {strides = array<i32>} : memref<1x32x196xf32, #tpu.memory_space<vmem>>, vector<1x32x196xf32>,
    return
  }
  func.func @transform_0(%arg0: i32) -> (i32, i32, i32) {
    %c0_i32 = arith.constant 0 : i32
    %c0_i32_0 = arith.constant 0 : i32
    %c0_i32_1 = arith.constant 0 : i32
    return %arg0, %c0_i32, %c0_i32_0 : i32, i32, i32
  }
  func.func @transform_1(%arg0: i32) -> (i32, i32) {
    %c0_i32 = arith.constant 0 : i32
    %c0_i32_0 = arith.constant 0 : i32
    %c0_i32_1 = arith.constant 0 : i32
    return %c0_i32, %c0_i32_0 : i32, i32
  }
  func.func @transform_2(%arg0: i32) -> (i32, i32) {
    %c0_i32 = arith.constant 0 : i32
    %c0_i32_0 = arith.constant 0 : i32
    %c0_i32_1 = arith.constant 0 : i32
    return %c0_i32, %c0_i32_0 : i32, i32
  }
  func.func @transform_3(%arg0: i32) -> (i32, i32, i32) {
    %c0_i32 = arith.constant 0 : i32
    %c0_i32_0 = arith.constant 0 : i32
    %c0_i32_1 = arith.constant 0 : i32
    return %arg0, %c0_i32, %c0_i32_0 : i32, i32, i32
  }
}

</mosaic_0001>

<bundles_post_ra>
// kernel: relu_conv2d_packed.1
= control target key start
LH: loop header
LB: loop body
LE: loop exit
PB: predicated region body
PF: predicated region fallthrough
CT: control target
= control target key end

     0   :  { %v911_v3 = vmov 0.0   ;;  %s912_s10 = smov 15   ;;  %s914_s11 = smov 14   ;;  %vm420_vm0 = vcmask 121856   ;;  %vm736_vm1 = vcmask 1039360   ;;  %vm588_vm2 = vcmask 113664   ;;  %s1524_s0 = inlined_call_operand.vmem [shape: f32[1,128,196], index: 0, kind: input, shape index: {}]   ;;  %s1525_s1 = inlined_call_operand.vmem [shape: f32[288,128], index: 1, kind: input, shape index: {}]   ;;  %s1526_s2 = inlined_call_operand.vmem [shape: s32[1,196], index: 2, kind: input, shape index: {}]   ;;  %s1527_s3 = inlined_call_operand.vmem [shape: f32[1,32,196], index: 3, kind: output, shape index: {}]  }
   0x1   :  { %v15_v0 = vld [vmem:[%s1524_s0 + $0x8] sm:$0xff]  ;;  %v17_v1 = vld [vmem:[%s1524_s0 + $0x18] sm:$0xff]  ;;  %v14_v2 = vld [vmem:[%s1524_s0] sm:$0xff]  ;;  %178 = vmatprep.mubr.f32.mxu0 %v911_v3  ;;  %286 = vmatprep.mubr.f32.mxu1 %v911_v3  ;;  %s915_s12 = smov 115   ;;  %s916_s13 = smov 13   ;;  %vm510_vm3 = vcmask 941056  }
   0x2   :  { %v47_v4 = vmax.f32 %v15_v0, 0.0  ;;  %v49_v5 = vmax.f32 %v17_v1, 0.0  ;;  %v16_v6 = vld [vmem:[%s1524_s0 + $0x10] sm:$0xff]  ;;  %v46_v7 = vmax.f32 %v14_v2, 0.0  ;;  %v19_v8 = vld [vmem:[%s1524_s0 + $0x28] sm:$0xff]  ;;  %v21_v9 = vld [vmem:[%s1524_s0 + $0x38] sm:$0xff] }
   0x3   :  { %v48_v10 = vmax.f32 %v16_v6, 0.0  ;;  %v51_v11 = vmax.f32 %v19_v8, 0.0  ;;  %v53_v12 = vmax.f32 %v21_v9, 0.0  ;;  %v18_v13 = vld [vmem:[%s1524_s0 + $0x20] sm:$0xff]  ;;  %v20_v14 = vld [vmem:[%s1524_s0 + $0x30] sm:$0xff]  ;;  %v23_v15 = vld [vmem:[%s1524_s0 + $0x48] sm:$0xff] }
   0x4   :  { %v853_v16 = vpack.c.bf16 %v49_v5, %v47_v4  ;;  %v50_v17 = vmax.f32 %v18_v13, 0.0  ;;  %v52_v18 = vmax.f32 %v20_v14, 0.0  ;;  %v25_v19 = vld [vmem:[%s1524_s0 + $0x58] sm:$0xff]  ;;  %v55_v20 = vmax.f32 %v23_v15, 0.0  ;;  %v22_v21 = vld [vmem:[%s1524_s0 + $0x40] sm:$0xff]  ;;  %v24_v22 = vld [vmem:[%s1524_s0 + $0x50] sm:$0xff] }
   0x5   :  { %v855_v23 = vpack.c.bf16 %v48_v10, %v46_v7  ;;  %v857_v24 = vpack.c.bf16 %v53_v12, %v51_v11  ;;  %v57_v25 = vmax.f32 %v25_v19, 0.0  ;;  %v27_v26 = vld [vmem:[%s1524_s0 + $0x68] sm:$0xff]  ;;  %v29_v27 = vld [vmem:[%s1524_s0 + $0x78] sm:$0xff]  ;;  %v54_v29 = vmax.f32 %v22_v21, 0.0  ;;  %v26_v34 = vld [vmem:[%s1524_s0 + $0x60] sm:$0xff]  ;;  %s917_s14 = smov 114  }
   0x6   :  { %854 = vmatprep.subr.bf16.mxu0 %v853_v16  ;;  %885 = vmatprep.subr.bf16.mxu1 %v853_v16  ;;  %v859_v28 = vpack.c.bf16 %v52_v18, %v50_v17  ;;  %v56_v30 = vmax.f32 %v24_v22, 0.0  ;;  %v59_v32 = vmax.f32 %v27_v26, 0.0  ;;  %v61_v33 = vmax.f32 %v29_v27, 0.0  ;;  %v28_v35 = vld [vmem:[%s1524_s0 + $0x70] sm:$0xff]  ;;  %v31_v36 = vld [vmem:[%s1524_s0 + $0x88] sm:$0xff]  ;;  %v33_v37 = vld [vmem:[%s1524_s0 + $0x98] sm:$0xff] }
   0x7   :  { %856 = vmatpush1.bf16.msra.mxu0 %v855_v23  ;;  %893 = vmatpush1.bf16.msra.mxu1 %v855_v23  ;;  %v861_v31 = vpack.c.bf16 %v57_v25, %v55_v20  ;;  %v58_v39 = vmax.f32 %v26_v34, 0.0  ;;  %v60_v40 = vmax.f32 %v28_v35, 0.0  ;;  %v63_v42 = vmax.f32 %v31_v36, 0.0  ;;  %v30_v44 = vld [vmem:[%s1524_s0 + $0x80] sm:$0xff]  ;;  %v32_v45 = vld [vmem:[%s1524_s0 + $0x90] sm:$0xff]  ;;  %v35_v46 = vld [vmem:[%s1524_s0 + $0xa8] sm:$0xff] }
   0x8   :  { %858 = vmatprep.subr.bf16.mxu0 %v857_v24  ;;  %886 = vmatprep.subr.bf16.mxu1 %v857_v24  ;;  %v863_v38 = vpack.c.bf16 %v56_v30, %v54_v29  ;;  %v865_v41 = vpack.c.bf16 %v61_v33, %v59_v32  ;;  %v65_v43 = vmax.f32 %v33_v37, 0.0  ;;  %v37_v47 = vld [vmem:[%s1524_s0 + $0xb8] sm:$0xff]  ;;  %v62_v49 = vmax.f32 %v30_v44, 0.0  ;;  %v34_v54 = vld [vmem:[%s1524_s0 + $0xa0] sm:$0xff]  ;;  %v36_v55 = vld [vmem:[%s1524_s0 + $0xb0] sm:$0xff]  ;;  %s918_s15 = smov 1  }
   0x9   :  { %v867_v48 = vpack.c.bf16 %v60_v40, %v58_v39  ;;  %v64_v50 = vmax.f32 %v32_v45, 0.0  ;;  %v67_v52 = vmax.f32 %v35_v46, 0.0  ;;  %v69_v53 = vmax.f32 %v37_v47, 0.0  ;;  %v39_v56 = vld [vmem:[%s1524_s0 + $0xc8] sm:$0xff]  ;;  %v41_v57 = vld [vmem:[%s1524_s0 + $0xd8] sm:$0xff]  ;;  %v38_v0 = vld [vmem:[%s1524_s0 + $0xc0] sm:$0xff] }
   0xa   :  { %v869_v51 = vpack.c.bf16 %v65_v43, %v63_v42  ;;  %v66_v59 = vmax.f32 %v34_v54, 0.0  ;;  %v68_v60 = vmax.f32 %v36_v55, 0.0  ;;  %v71_v62 = vmax.f32 %v39_v56, 0.0  ;;  %v40_v1 = vld [vmem:[%s1524_s0 + $0xd0] sm:$0xff]  ;;  %v43_v2 = vld [vmem:[%s1524_s0 + $0xe8] sm:$0xff]  ;;  %v45_v4 = vld [vmem:[%s1524_s0 + $0xf8] sm:$0xff] }
   0xb   :  { %860 = vmatpush1.bf16.msra.mxu0 %v859_v28  ;;  %894 = vmatpush1.bf16.msra.mxu1 %v859_v28  ;;  %v871_v58 = vpack.c.bf16 %v64_v50, %v62_v49  ;;  %v873_v61 = vpack.c.bf16 %v69_v53, %v67_v52  ;;  %v73_v63 = vmax.f32 %v41_v57, 0.0  ;;  %v70_v6 = vmax.f32 %v38_v0, 0.0  ;;  %v42_v11 = vld [vmem:[%s1524_s0 + $0xe0] sm:$0xff]  ;;  %v44_v12 = vld [vmem:[%s1524_s0 + $0xf0] sm:$0xff]  ;;  %v79_v20 = vld [vmem:[%s1525_s1 + $0x8] sm:$0xff]  ;;  %s919_s16 = smov 113  }
   0xc   :  { %862 = vmatprep.subr.bf16.mxu0 %v861_v31  ;;  %887 = vmatprep.subr.bf16.mxu1 %v861_v31  ;;  %v875_v5 = vpack.c.bf16 %v68_v60, %v66_v59  ;;  %v72_v7 = vmax.f32 %v40_v1, 0.0  ;;  %v75_v9 = vmax.f32 %v43_v2, 0.0  ;;  %v77_v10 = vmax.f32 %v45_v4, 0.0  ;;  %v78_v18 = vld [vmem:[%s1525_s1] sm:$0xff]  ;;  %v96_v19 = vld [vmem:[%s1525_s1 + $0x90] sm:$0xff]  ;;  %v97_v21 = vld [vmem:[%s1525_s1 + $0x98] sm:$0xff] }
   0xd   :  { %v877_v8 = vpack.c.bf16 %v73_v63, %v71_v62  ;;  %v74_v14 = vmax.f32 %v42_v11, 0.0  ;;  %v76_v15 = vmax.f32 %v44_v12, 0.0  ;;  %v80_v22 = vld [vmem:[%s1525_s1 + $0x10] sm:$0xff]  ;;  %v98_v23 = vld [vmem:[%s1525_s1 + $0xa0] sm:$0xff]  ;;  %v81_v24 = vld [vmem:[%s1525_s1 + $0x18] sm:$0xff]  ;;  %vm461_vm5 = vcmask 7168  }
   0xe   :  { %v879_v13 = vpack.c.bf16 %v72_v7, %v70_v6  ;;  %v881_v16 = vpack.c.bf16 %v77_v10, %v75_v9  ;;  %v99_v25 = vld [vmem:[%s1525_s1 + $0xa8] sm:$0xff]  ;;  %v82_v26 = vld [vmem:[%s1525_s1 + $0x20] sm:$0xff]  ;;  %v100_v27 = vld [vmem:[%s1525_s1 + $0xb0] sm:$0xff]  ;;  %vm637_vm6 = vcmask 932864   ;;  %vm650_vm7 = vcmask 441344  }
   0xf   :  { %864 = vmatpush1.bf16.msra.mxu0 %v863_v38  ;;  %895 = vmatpush1.bf16.msra.mxu1 %v863_v38  ;;  %v883_v17 = vpack.c.bf16 %v76_v15, %v74_v14  ;;  %v83_v28 = vld [vmem:[%s1525_s1 + $0x28] sm:$0xff]  ;;  %v101_v29 = vld [vmem:[%s1525_s1 + $0xb8] sm:$0xff]  ;;  %v102_v30 = vld [vmem:[%s1525_s1 + $0xc0] sm:$0xff]  ;;  %vm523_vm9 = vcmask 449536   ;;  %vm695_vm12 = vcmask 105472   ;;  %vm749_vm13 = vcmask 547840  }
  0x10   :  { %866 = vmatprep.subr.bf16.mxu0 %v865_v41  ;;  %888 = vmatprep.subr.bf16.mxu1 %v865_v41  ;;  %v84_v31 = vld [vmem:[%s1525_s1 + $0x30] sm:$0xff]  ;;  %v103_v32 = vld [vmem:[%s1525_s1 + $0xc8] sm:$0xff]  ;;  %v85_v33 = vld [vmem:[%s1525_s1 + $0x38] sm:$0xff]  ;;  %vm786_vm14 = vcmask 924672   ;;  %vm799_vm15 = vcmask 433152  }
  0x11   :  { %v104_v34 = vld [vmem:[%s1525_s1 + $0xd0] sm:$0xff]  ;;  %v86_v35 = vld [vmem:[%s1525_s1 + $0x40] sm:$0xff]  ;;  %v105_v36 = vld [vmem:[%s1525_s1 + $0xd8] sm:$0xff] }
  0x12   :  { %v87_v37 = vld [vmem:[%s1525_s1 + $0x48] sm:$0xff]  ;;  %v88_v38 = vld [vmem:[%s1525_s1 + $0x50] sm:$0xff]  ;;  %v106_v39 = vld [vmem:[%s1525_s1 + $0xe0] sm:$0xff] }
  0x13   :  { %868 = vmatpush1.bf16.msra.mxu0 %v867_v48  ;;  %896 = vmatpush1.bf16.msra.mxu1 %v867_v48  ;;  %v89_v40 = vld [vmem:[%s1525_s1 + $0x58] sm:$0xff]  ;;  %v107_v41 = vld [vmem:[%s1525_s1 + $0xe8] sm:$0xff]  ;;  %v90_v42 = vld [vmem:[%s1525_s1 + $0x60] sm:$0xff] }
  0x14   :  { %870 = vmatprep.subr.bf16.mxu0 %v869_v51  ;;  %889 = vmatprep.subr.bf16.mxu1 %v869_v51  ;;  %v108_v43 = vld [vmem:[%s1525_s1 + $0xf0] sm:$0xff]  ;;  %v91_v44 = vld [vmem:[%s1525_s1 + $0x68] sm:$0xff]  ;;  %v109_v45 = vld [vmem:[%s1525_s1 + $0xf8] sm:$0xff] }
  0x15   :  { %v92_v46 = vld [vmem:[%s1525_s1 + $0x70] sm:$0xff]  ;;  %v110_v47 = vld [vmem:[%s1525_s1 + $0x100] sm:$0xff]  ;;  %v93_v48 = vld [vmem:[%s1525_s1 + $0x78] sm:$0xff] }
  0x16   :  { %v111_v49 = vld [vmem:[%s1525_s1 + $0x108] sm:$0xff]  ;;  %v112_v50 = vld [vmem:[%s1525_s1 + $0x110] sm:$0xff]  ;;  %v94_v51 = vld [vmem:[%s1525_s1 + $0x80] sm:$0xff] }
  0x17   :  { %872 = vmatpush1.bf16.msra.mxu0 %v871_v58  ;;  %897 = vmatpush1.bf16.msra.mxu1 %v871_v58  ;;  %v113_v52 = vld [vmem:[%s1525_s1 + $0x118] sm:$0xff]  ;;  %v95_v53 = vld [vmem:[%s1525_s1 + $0x88] sm:$0xff]  ;;  %s913_s1 = smov 127  }
  0x18   :  { %874 = vmatprep.subr.bf16.mxu0 %v873_v61  ;;  %890 = vmatprep.subr.bf16.mxu1 %v873_v61 }
  0x1b   :  { %876 = vmatpush1.bf16.msra.mxu0 %v875_v5  ;;  %898 = vmatpush1.bf16.msra.mxu1 %v875_v5 }
  0x1c   :  { %878 = vmatprep.subr.bf16.mxu0 %v877_v8  ;;  %891 = vmatprep.subr.bf16.mxu1 %v877_v8 }
  0x1f   :  { %880 = vmatpush1.bf16.msra.mxu0 %v879_v13  ;;  %899 = vmatpush1.bf16.msra.mxu1 %v879_v13 }
  0x20   :  { %882 = vmatprep.subr.bf16.mxu0 %v881_v16  ;;  %892 = vmatprep.subr.bf16.mxu1 %v881_v16 }
  0x23   :  { %884 = vmatpush1.bf16.msra.mxu0 %v883_v17  ;;  %900 = vmatpush1.bf16.msra.mxu1 %v883_v17 }
  0x26   :  { %179 = vmatmul.mubr.f32.vlgmr.msra.gmra.mrb[0].mxu0 %v78_v18  ;;  %287 = vmatmul.mubr.f32.vlgmr.msra.gmra.mrb[0].mxu1 %v96_v19 }
  0x27   :  { %184 = vmatprep.mubr.f32.mxu0 %v911_v3  ;;  %292 = vmatprep.mubr.f32.mxu1 %v911_v3 }
  0x2a   :  { %185 = vmatmul.mubr.f32.gmra.mrb[2].mxu0 %v79_v20  ;;  %293 = vmatmul.mubr.f32.gmra.mrb[2].mxu1 %v97_v21 }
  0x2b   :  { %190 = vmatprep.mubr.f32.mxu0 %v911_v3  ;;  %298 = vmatprep.mubr.f32.mxu1 %v911_v3 }
  0x2e   :  { %191 = vmatmul.mubr.f32.gmra.mrb[4].mxu0 %v80_v22  ;;  %299 = vmatmul.mubr.f32.gmra.mrb[4].mxu1 %v98_v23 }
  0x2f   :  { %196 = vmatprep.mubr.f32.mxu0 %v911_v3  ;;  %304 = vmatprep.mubr.f32.mxu1 %v911_v3 }
  0x32   :  { %197 = vmatmul.mubr.f32.gmra.mrb[6].mxu0 %v81_v24  ;;  %305 = vmatmul.mubr.f32.gmra.mrb[6].mxu1 %v99_v25 }
  0x33   :  { %202 = vmatprep.mubr.f32.mxu0 %v911_v3  ;;  %310 = vmatprep.mubr.f32.mxu1 %v911_v3 }
  0x36   :  { %203 = vmatmul.mubr.f32.gmra.mrb[8].mxu0 %v82_v26  ;;  %311 = vmatmul.mubr.f32.gmra.mrb[8].mxu1 %v100_v27 }
  0x37   :  { %208 = vmatprep.mubr.f32.mxu0 %v911_v3  ;;  %316 = vmatprep.mubr.f32.mxu1 %v911_v3 }
  0x3a   :  { %209 = vmatmul.mubr.f32.gmra.mrb[10].mxu0 %v83_v28  ;;  %317 = vmatmul.mubr.f32.gmra.mrb[10].mxu1 %v101_v29 }
  0x3b   :  { %322 = vmatprep.mubr.f32.mxu1 %v911_v3  ;;  %214 = vmatprep.mubr.f32.mxu0 %v911_v3 }
  0x3e   :  { %323 = vmatmul.mubr.f32.gmra.mrb[12].mxu1 %v102_v30  ;;  %215 = vmatmul.mubr.f32.gmra.mrb[12].mxu0 %v84_v31 }
  0x3f   :  { %328 = vmatprep.mubr.f32.mxu1 %v911_v3  ;;  %220 = vmatprep.mubr.f32.mxu0 %v911_v3 }
  0x42   :  { %329 = vmatmul.mubr.f32.gmra.mrb[14].mxu1 %v103_v32  ;;  %221 = vmatmul.mubr.f32.gmra.mrb[14].mxu0 %v85_v33 }
  0x43   :  { %334 = vmatprep.mubr.f32.mxu1 %v911_v3  ;;  %226 = vmatprep.mubr.f32.mxu0 %v911_v3 }
  0x46   :  { %335 = vmatmul.mubr.f32.gmra.mrb[16].mxu1 %v104_v34  ;;  %227 = vmatmul.mubr.f32.gmra.mrb[16].mxu0 %v86_v35 }
  0x47   :  { %340 = vmatprep.mubr.f32.mxu1 %v911_v3  ;;  %232 = vmatprep.mubr.f32.mxu0 %v911_v3 }
  0x4a   :  { %341 = vmatmul.mubr.f32.gmra.mrb[18].mxu1 %v105_v36  ;;  %233 = vmatmul.mubr.f32.gmra.mrb[18].mxu0 %v87_v37 }
  0x4b   :  { %238 = vmatprep.mubr.f32.mxu0 %v911_v3  ;;  %346 = vmatprep.mubr.f32.mxu1 %v911_v3 }
  0x4e   :  { %239 = vmatmul.mubr.f32.gmra.mrb[20].mxu0 %v88_v38  ;;  %347 = vmatmul.mubr.f32.gmra.mrb[20].mxu1 %v106_v39 }
  0x4f   :  { %244 = vmatprep.mubr.f32.mxu0 %v911_v3  ;;  %352 = vmatprep.mubr.f32.mxu1 %v911_v3 }
  0x52   :  { %245 = vmatmul.mubr.f32.gmra.mrb[22].mxu0 %v89_v40  ;;  %353 = vmatmul.mubr.f32.gmra.mrb[22].mxu1 %v107_v41 }
  0x53   :  { %250 = vmatprep.mubr.f32.mxu0 %v911_v3  ;;  %358 = vmatprep.mubr.f32.mxu1 %v911_v3 }
  0x56   :  { %251 = vmatmul.mubr.f32.gmra.mrb[24].mxu0 %v90_v42  ;;  %359 = vmatmul.mubr.f32.gmra.mrb[24].mxu1 %v108_v43 }
  0x57   :  { %256 = vmatprep.mubr.f32.mxu0 %v911_v3  ;;  %364 = vmatprep.mubr.f32.mxu1 %v911_v3 }
  0x5a   :  { %257 = vmatmul.mubr.f32.gmra.mrb[26].mxu0 %v91_v44  ;;  %365 = vmatmul.mubr.f32.gmra.mrb[26].mxu1 %v109_v45 }
  0x5b   :  { %262 = vmatprep.mubr.f32.mxu0 %v911_v3  ;;  %370 = vmatprep.mubr.f32.mxu1 %v911_v3 }
  0x5e   :  { %263 = vmatmul.mubr.f32.gmra.mrb[28].mxu0 %v92_v46  ;;  %371 = vmatmul.mubr.f32.gmra.mrb[28].mxu1 %v110_v47 }
  0x5f   :  { %268 = vmatprep.mubr.f32.mxu0 %v911_v3  ;;  %376 = vmatprep.mubr.f32.mxu1 %v911_v3 }
  0x62   :  { %269 = vmatmul.mubr.f32.gmra.mrb[30].mxu0 %v93_v48  ;;  %377 = vmatmul.mubr.f32.gmra.mrb[30].mxu1 %v111_v49 }
  0x63   :  { %382 = vmatprep.mubr.f32.mxu1 %v911_v3  ;;  %274 = vmatprep.mubr.f32.mxu0 %v911_v3 }
  0x66   :  { %383 = vmatmul.mubr.f32.gmra.mrb[32].mxu1 %v112_v50  ;;  %275 = vmatmul.mubr.f32.gmra.mrb[32].mxu0 %v94_v51 }
  0x67   :  { %388 = vmatprep.mubr.f32.mxu1 %v911_v3  ;;  %280 = vmatprep.mubr.f32.mxu0 %v911_v3 }
  0x6a   :  { %389 = vmatmul.mubr.f32.gmra.mrb[34].mxu1 %v113_v52  ;;  %281 = vmatmul.mubr.f32.gmra.mrb[34].mxu0 %v95_v53 }
  0xf9   :  { %v180_v54 = vpop.f32.mrb[0].mxu0  ;;  %v1181_v55 = vpop.f32.mrb[0].mxu1 }
  0xfa   :  { %404 = vrot.lane.b32.xlu0 %v180_v54, %s912_s10  ;;  %v182_v56 = vpop.f32.mrb[1].mxu0  ;;  %v1184_v57 = vpop.f32.mrb[1].mxu1 }
  0xfd   :  { %v186_v58 = vpop.f32.mrb[2].mxu0  ;;  %v1186_v59 = vpop.f32.mrb[2].mxu1 }
  0xfe   :  { %406 = vrot.lane.b32.xlu0 %v182_v56, %s912_s10  ;;  %408 = vrot.lane.b32.xlu1 %v186_v58, %s912_s10  ;;  %v188_v3 = vpop.f32.mrb[3].mxu0  ;;  %v1190_v60 = vpop.f32.mrb[3].mxu1 }
 0x101   :  { %v192_v61 = vpop.f32.mrb[4].mxu0  ;;  %v300_v62 = vpop.f32.mrb[4].mxu1 }
 0x102   :  { %410 = vrot.lane.b32.xlu1 %v188_v3, %s912_s10  ;;  %412 = vrot.lane.b32.xlu0 %v192_v61, %s912_s10  ;;  %v194_v63 = vpop.f32.mrb[5].mxu0  ;;  %v302_v0 = vpop.f32.mrb[5].mxu1 }
 0x105   :  { %v198_v1 = vpop.f32.mrb[6].mxu0  ;;  %v306_v2 = vpop.f32.mrb[6].mxu1 }
 0x106   :  { %720 = vrot.lane.b32.xlu0 %v300_v62, %s913_s1  ;;  %414 = vrot.lane.b32.xlu1 %v194_v63, %s912_s10  ;;  %v200_v4 = vpop.f32.mrb[7].mxu0  ;;  %v308_v5 = vpop.f32.mrb[7].mxu1 }
 0x109   :  { %v204_v6 = vpop.f32.mrb[8].mxu0  ;;  %v312_v7 = vpop.f32.mrb[8].mxu1 }
 0x10a   :  { %722 = vrot.lane.b32.xlu1 %v302_v0, %s913_s1  ;;  %416 = vrot.lane.b32.xlu0 %v198_v1, %s912_s10  ;;  %v206_v8 = vpop.f32.mrb[9].mxu0  ;;  %v314_v9 = vpop.f32.mrb[9].mxu1 }
 0x10d   :  { %v210_v10 = vpop.f32.mrb[10].mxu0  ;;  %v318_v11 = vpop.f32.mrb[10].mxu1 }
 0x10e   :  { %724 = vrot.lane.b32.xlu0 %v306_v2, %s913_s1  ;;  %418 = vrot.lane.b32.xlu1 %v200_v4, %s912_s10  ;;  %v212_v12 = vpop.f32.mrb[11].mxu0  ;;  %v320_v13 = vpop.f32.mrb[11].mxu1 }
 0x111   :  { %v324_v14 = vpop.f32.mrb[12].mxu1  ;;  %v216_v15 = vpop.f32.mrb[12].mxu0 }
 0x112   :  { %726 = vrot.lane.b32.xlu1 %v308_v5, %s913_s1  ;;  %572 = vrot.lane.b32.xlu0 %v204_v6, %s914_s11  ;;  %v326_v16 = vpop.f32.mrb[13].mxu1  ;;  %v218_v17 = vpop.f32.mrb[13].mxu0 }
 0x115   :  { %v330_v18 = vpop.f32.mrb[14].mxu1  ;;  %v222_v19 = vpop.f32.mrb[14].mxu0 }
 0x116   :  { %728 = vrot.lane.b32.xlu0 %v312_v7, %s913_s1  ;;  %574 = vrot.lane.b32.xlu1 %v206_v8, %s914_s11  ;;  %v332_v20 = vpop.f32.mrb[15].mxu1  ;;  %v224_v21 = vpop.f32.mrb[15].mxu0 }
 0x119   :  { %v336_v22 = vpop.f32.mrb[16].mxu1  ;;  %v228_v23 = vpop.f32.mrb[16].mxu0 }
 0x11a   :  { %730 = vrot.lane.b32.xlu1 %v314_v9, %s913_s1  ;;  %576 = vrot.lane.b32.xlu0 %v210_v10, %s914_s11  ;;  %v338_v24 = vpop.f32.mrb[17].mxu1  ;;  %v230_v25 = vpop.f32.mrb[17].mxu0 }
 0x11d   :  { %v342_v26 = vpop.f32.mrb[18].mxu1  ;;  %v234_v27 = vpop.f32.mrb[18].mxu0 }
 0x11e   :  { %732 = vrot.lane.b32.xlu0 %v318_v11, %s913_s1  ;;  %578 = vrot.lane.b32.xlu1 %v212_v12, %s914_s11  ;;  %v344_v28 = vpop.f32.mrb[19].mxu1  ;;  %v236_v29 = vpop.f32.mrb[19].mxu0 }
 0x121   :  { %v240_v30 = vpop.f32.mrb[20].mxu0  ;;  %v348_v31 = vpop.f32.mrb[20].mxu1 }
 0x122   :  { %494 = vrot.lane.b32.xlu0 %v324_v14, %s915_s12  ;;  %734 = vrot.lane.b32.xlu1 %v320_v13, %s913_s1  ;;  %v242_v32 = vpop.f32.mrb[21].mxu0  ;;  %v350_v33 = vpop.f32.mrb[21].mxu1 }
 0x125   :  { %v246_v34 = vpop.f32.mrb[22].mxu0  ;;  %v354_v35 = vpop.f32.mrb[22].mxu1 }
 0x126   :  { %496 = vrot.lane.b32.xlu1 %v326_v16, %s915_s12  ;;  %580 = vrot.lane.b32.xlu0 %v216_v15, %s914_s11  ;;  %v248_v36 = vpop.f32.mrb[23].mxu0  ;;  %v356_v37 = vpop.f32.mrb[23].mxu1 }
 0x129   :  { %v252_v38 = vpop.f32.mrb[24].mxu0  ;;  %v360_v39 = vpop.f32.mrb[24].mxu1 }
 0x12a   :  { %498 = vrot.lane.b32.xlu0 %v330_v18, %s915_s12  ;;  %582 = vrot.lane.b32.xlu1 %v218_v17, %s914_s11  ;;  %v254_v40 = vpop.f32.mrb[25].mxu0  ;;  %v362_v41 = vpop.f32.mrb[25].mxu1 }
 0x12d   :  { %v258_v42 = vpop.f32.mrb[26].mxu0  ;;  %v366_v43 = vpop.f32.mrb[26].mxu1 }
 0x12e   :  { %500 = vrot.lane.b32.xlu1 %v332_v20, %s915_s12  ;;  %584 = vrot.lane.b32.xlu0 %v222_v19, %s914_s11  ;;  %v260_v44 = vpop.f32.mrb[27].mxu0  ;;  %v368_v45 = vpop.f32.mrb[27].mxu1 }
 0x131   :  { %v264_v46 = vpop.f32.mrb[28].mxu0  ;;  %v372_v47 = vpop.f32.mrb[28].mxu1 }
 0x132   :  { %502 = vrot.lane.b32.xlu0 %v336_v22, %s915_s12  ;;  %586 = vrot.lane.b32.xlu1 %v224_v21, %s914_s11  ;;  %v266_v48 = vpop.f32.mrb[29].mxu0  ;;  %v374_v49 = vpop.f32.mrb[29].mxu1 }
 0x135   :  { %v270_v50 = vpop.f32.mrb[30].mxu0  ;;  %v378_v51 = vpop.f32.mrb[30].mxu1 }
 0x136   :  { %504 = vrot.lane.b32.xlu1 %v338_v24, %s915_s12  ;;  %679 = vrot.lane.b32.xlu0 %v228_v23, %s916_s13  ;;  %v272_v52 = vpop.f32.mrb[31].mxu0  ;;  %v380_v53 = vpop.f32.mrb[31].mxu1 }
 0x139   :  { %v384_v54 = vpop.f32.mrb[32].mxu1  ;;  %v1219_v56 = vpop.f32.mrb[32].mxu0 }
 0x13a   :  { %506 = vrot.lane.b32.xlu0 %v342_v26, %s915_s12  ;;  %681 = vrot.lane.b32.xlu1 %v230_v25, %s916_s13  ;;  %v386_v58 = vpop.f32.mrb[33].mxu1  ;;  %v1222_v3 = vpop.f32.mrb[33].mxu0 }
 0x13d   :  { %v390_v61 = vpop.f32.mrb[34].mxu1  ;;  %v1224_v62 = vpop.f32.mrb[34].mxu0 }
 0x13e   :  { %508 = vrot.lane.b32.xlu1 %v344_v28, %s915_s12  ;;  %683 = vrot.lane.b32.xlu0 %v234_v27, %s916_s13  ;;  %v392_v63 = vpop.f32.mrb[35].mxu1  ;;  %v1227_v0 = vpop.f32.mrb[35].mxu0 }
 0x142   :  { %685 = vrot.lane.b32.xlu1 %v236_v29, %s916_s13  ;;  %687 = vrot.lane.b32.xlu0 %v240_v30, %s916_s13 }
 0x146   :  { %621 = vrot.lane.b32.xlu0 %v348_v31, %s917_s14  ;;  %689 = vrot.lane.b32.xlu1 %v242_v32, %s916_s13 }
 0x14a   :  { %623 = vrot.lane.b32.xlu1 %v350_v33, %s917_s14  ;;  %691 = vrot.lane.b32.xlu0 %v246_v34, %s916_s13 }
 0x14e   :  { %625 = vrot.lane.b32.xlu0 %v354_v35, %s917_s14  ;;  %693 = vrot.lane.b32.xlu1 %v248_v36, %s916_s13 }
 0x152   :  { %627 = vrot.lane.b32.xlu1 %v356_v37, %s917_s14  ;;  %445 = vrot.lane.b32.xlu0 %v252_v38, %s918_s15 }
 0x156   :  { %629 = vrot.lane.b32.xlu0 %v360_v39, %s917_s14  ;;  %447 = vrot.lane.b32.xlu1 %v254_v40, %s918_s15 }
 0x15a   :  { %631 = vrot.lane.b32.xlu1 %v362_v41, %s917_s14  ;;  %449 = vrot.lane.b32.xlu0 %v258_v42, %s918_s15 }
 0x15e   :  { %633 = vrot.lane.b32.xlu0 %v366_v43, %s917_s14  ;;  %451 = vrot.lane.b32.xlu1 %v260_v44, %s918_s15 }
 0x162   :  { %635 = vrot.lane.b32.xlu1 %v368_v45, %s917_s14  ;;  %453 = vrot.lane.b32.xlu0 %v264_v46, %s918_s15 }
 0x166   :  { %770 = vrot.lane.b32.xlu0 %v372_v47, %s919_s16  ;;  %455 = vrot.lane.b32.xlu1 %v266_v48, %s918_s15 }
 0x16a   :  { %772 = vrot.lane.b32.xlu1 %v374_v49, %s919_s16  ;;  %457 = vrot.lane.b32.xlu0 %v270_v50, %s918_s15 }
 0x16c   :  { %v1229_v1 = vpop.permute.xlu0 %404 }
 0x16e   :  { %459 = vrot.lane.b32.xlu1 %v272_v52, %s918_s15  ;;  %774 = vrot.lane.b32.xlu0 %v378_v51, %s919_s16 }
 0x170   :  { %v407_v2 = vpop.permute.xlu0 %406  ;;  %v1231_v4 = vpop.permute.xlu1 %408 }
 0x171   :  { %v1235_v5 = vsel %vm420_vm0, %v1229_v1, %v407_v2  ;;  %v538_v2 = vlaneseq }
 0x172   :  { %776 = vrot.lane.b32.xlu1 %v380_v53, %s919_s16  ;;  %778 = vrot.lane.b32.xlu0 %v384_v54, %s919_s16 }
 0x174   :  { %v411_v6 = vpop.permute.xlu1 %410  ;;  %v1237_v7 = vpop.permute.xlu0 %412 }
 0x175   :  { %v1241_v8 = vsel %vm420_vm0, %v1231_v4, %v411_v6 }
 0x176   :  { %780 = vrot.lane.b32.xlu1 %v386_v58, %s919_s16  ;;  %782 = vrot.lane.b32.xlu0 %v390_v61, %s919_s16 }
 0x178   :  { %v721_v9 = vpop.permute.xlu0 %720  ;;  %v415_v10 = vpop.permute.xlu1 %414 }
 0x179   :  { %v1245_v11 = vsel %vm420_vm0, %v1237_v7, %v415_v10  ;;  %v1339_v10 = vshrl.u32 %v538_v2, 7 }
 0x17a   :  { %784 = vrot.lane.b32.xlu1 %v392_v63, %s919_s16 }
 0x17c   :  { %v1247_v12 = vpop.permute.xlu1 %722  ;;  %v1249_v13 = vpop.permute.xlu0 %416 }
 0x17d   :  { %v1253_v14 = vsel %vm736_vm1, %v721_v9, %v1247_v12  ;;  %v395_v9 = vld [vmem:[%s1526_s2] sm:$0x3] }
 0x17e   :  { %vm536_vm4 = vcmp.ge.s32.totalorder %v395_v9, 1  ;;  %vm812_vm11 = vcmp.le.s32.totalorder %v395_v9, 12 }
 0x180   :  { %v725_v15 = vpop.permute.xlu0 %724  ;;  %v419_v16 = vpop.permute.xlu1 %418 }
 0x181   :  { %v1257_v17 = vsel %vm420_vm0, %v1249_v13, %v419_v16 }
 0x184   :  { %v1259_v18 = vpop.permute.xlu1 %726  ;;  %v573_v19 = vpop.permute.xlu0 %572 }
 0x185   :  { %v1263_v20 = vsel %vm736_vm1, %v725_v15, %v1259_v18  ;;  %v601_v21 = vsel %vm588_vm2, 0.0, %v573_v19 }
 0x186   :  { %v1267_v22 = vadd.f32 %v601_v21, %v1219_v56 }
 0x188   :  { %v729_v23 = vpop.permute.xlu0 %728  ;;  %v575_v24 = vpop.permute.xlu1 %574 }
 0x189   :  { %v589_v25 = vsel %vm588_vm2, %v573_v19, %v575_v24  ;;  %v540_v19 = vsub.s32 0, %v1339_v10  ;;  %v920_v24 = vmov 0  }
 0x18a   :  { %v1271_v26 = vadd.f32 %v589_v25, %v1222_v3  ;;  %v537_v25 = vsel %vm536_vm4, 1, %v920_v24 }
 0x18c   :  { %v1273_v27 = vpop.permute.xlu1 %730  ;;  %v577_v28 = vpop.permute.xlu0 %576 }
 0x18d   :  { %v1277_v29 = vsel %vm736_vm1, %v729_v23, %v1273_v27  ;;  %v602_v30 = vsel %vm588_vm2, 0.0, %v577_v28 }
 0x18e   :  { %v1281_v31 = vadd.f32 %v602_v30, %v1224_v62  ;;  %v544_v30 = vsub.s32 1, %v1339_v10 }
 0x190   :  { %v733_v32 = vpop.permute.xlu0 %732  ;;  %v579_v33 = vpop.permute.xlu1 %578 }
 0x191   :  { %v590_v34 = vsel %vm588_vm2, %v577_v28, %v579_v33  ;;  %v1346_v28 = vrot.slane %v537_v25, %v540_v19 }
 0x192   :  { %v1285_v35 = vadd.f32 %v590_v34, %v1227_v0  ;;  %v433_v34 = vsel %vm420_vm0, 0.0, %v1229_v1 }
 0x193   :  { %vm546_vm8 = vcmp.eq.s32.totalorder %v1346_v28, 1 }
 0x194   :  { %v495_v36 = vpop.permute.xlu0 %494  ;;  %v1287_v37 = vpop.permute.xlu1 %734 }
 0x195   :  { %v1291_v38 = vsel %vm736_vm1, %v733_v32, %v1287_v37 }
 0x198   :  { %v497_v39 = vpop.permute.xlu1 %496  ;;  %v581_v40 = vpop.permute.xlu0 %580 }
 0x199   :  { %v511_v41 = vsel %vm510_vm3, %v495_v36, %v497_v39  ;;  %v603_v42 = vsel %vm588_vm2, 0.0, %v581_v40 }
 0x19a   :  { %v1296_v43 = vadd.f32 %v603_v42, %v1181_v55 }
 0x19c   :  { %v499_v44 = vpop.permute.xlu0 %498  ;;  %v583_v45 = vpop.permute.xlu1 %582 }
 0x19d   :  { %v591_v46 = vsel %vm588_vm2, %v581_v40, %v583_v45 }
 0x19e   :  { %v1300_v47 = vadd.f32 %v591_v46, %v1184_v57 }
 0x1a0   :  { %v1302_v48 = vpop.permute.xlu1 %500  ;;  %v585_v49 = vpop.permute.xlu0 %584 }
 0x1a1   :  { %v1306_v50 = vsel %vm510_vm3, %v499_v44, %v1302_v48  ;;  %v604_v51 = vsel %vm588_vm2, 0.0, %v585_v49  ;;  %v1354_v44 = vrot.slane %v537_v25, %v544_v30  ;;  %v525_v9 = vsel %vm523_vm9, %v1302_v48, 0.0 }
 0x1a2   :  { %v1310_v52 = vadd.f32 %v604_v51, %v1186_v59 }
 0x1a3   :  { %vm547_vm10 = vcmp.eq.s32.totalorder %v1354_v44, 1 }
 0x1a4   :  { %v1312_v55 = vpop.permute.xlu0 %502  ;;  %v587_v53 = vpop.permute.xlu1 %586 }
 0x1a5   :  { %v592_v54 = vsel %vm588_vm2, %v585_v49, %v587_v53 }
 0x1a6   :  { %v1316_v57 = vadd.f32 %v592_v54, %v1190_v60 }
 0x1a8   :  { %v1318_v56 = vpop.permute.xlu1 %504  ;;  %v1320_v58 = vpop.permute.xlu0 %679 }
 0x1ac   :  { %v1322_v3 = vpop.permute.xlu0 %506  ;;  %v1324_v61 = vpop.permute.xlu1 %681 }
 0x1b0   :  { %v1326_v62 = vpop.permute.xlu1 %508  ;;  %v1328_v59 = vpop.permute.xlu0 %683 }
 0x1b4   :  { %v1330_v63 = vpop.permute.xlu1 %685  ;;  %v1332_v0 = vpop.permute.xlu0 %687 }
 0x1b8   :  { %v622_v6 = vpop.permute.xlu0 %621  ;;  %v1334_v60 = vpop.permute.xlu1 %689 }
 0x1bc   :  { %v624_v15 = vpop.permute.xlu1 %623  ;;  %v1341_v16 = vpop.permute.xlu0 %691 }
 0x1bd   :  { %v638_v40 = vsel %vm637_vm6, %v622_v6, %v624_v15  ;;  %v651_v1 = vsel %vm650_vm7, %v624_v15, 0.0  ;;  %v524_v6 = vsel %vm523_vm9, %v497_v39, 0.0 }
 0x1be   :  { %v655_v51 = vadd.f32 %v638_v40, %v1267_v22  ;;  %v434_v22 = vsel %vm420_vm0, 0.0, %v1231_v4 }
 0x1c0   :  { %v626_v21 = vpop.permute.xlu0 %625  ;;  %v1344_v23 = vpop.permute.xlu1 %693 }
 0x1c4   :  { %v628_v32 = vpop.permute.xlu1 %627  ;;  %v446_v33 = vpop.permute.xlu0 %445 }
 0x1c5   :  { %v474_v36 = vsel %vm461_vm5, 0.0, %v446_v33 }
 0x1c6   :  { %v478_v42 = vadd.f32 %v474_v36, %v433_v34  ;;  %v639_v36 = vsel %vm637_vm6, %v626_v21, %v628_v32 }
 0x1c8   :  { %v528_v45 = vadd.f32 %v511_v41, %v478_v42  ;;  %v630_v46 = vpop.permute.xlu0 %629  ;;  %v448_v49 = vpop.permute.xlu1 %447 }
 0x1c9   :  { %v462_v53 = vsel %vm461_vm5, %v446_v33, %v448_v49  ;;  %v656_v33 = vadd.f32 %v651_v1, %v1271_v26  ;;  %v652_v26 = vsel %vm650_vm7, %v628_v32, 0.0  ;;  %v813_v1 = vsel %vm812_vm11, 1, %v920_v24 }
 0x1ca   :  { %v548_v54 = vsel %vm546_vm8, %v528_v45, 0.0  ;;  %v479_v2 = vadd.f32 %v462_v53, %v1235_v5  ;;  %v658_v32 = vadd.f32 %v652_v26, %v1285_v35  ;;  %v708_v35 = vsel %vm695_vm12, 0.0, %v1320_v58 }
 0x1cb   :  { %v1364_v10 = vadd.f32 %v655_v51, %v548_v54  ;;  %v657_v51 = vadd.f32 %v639_v36, %v1281_v31  ;;  %v435_v31 = vsel %vm420_vm0, 0.0, %v1237_v7 }
 0x1cc   :  { %v529_v41 = vadd.f32 %v524_v6, %v479_v2  ;;  %v632_v25 = vpop.permute.xlu1 %631  ;;  %v450_v34 = vpop.permute.xlu0 %449 }
 0x1cd   :  { %v475_v15 = vsel %vm461_vm5, 0.0, %v450_v34 }
 0x1ce   :  { %v549_v5 = vsel %vm547_vm10, %v529_v41, 0.0  ;;  %v480_v39 = vadd.f32 %v475_v15, %v434_v22  ;;  %v1395_v22 = vrot.slane %v813_v1, %v544_v30  ;;  %v696_v30 = vsel %vm695_vm12, %v1320_v58, %v1324_v61 }
 0x1cf   :  { %v1373_v40 = vadd.f32 %v656_v33, %v549_v5  ;;  %v513_v33 = vsel %vm510_vm3, %v1312_v55, %v1318_v56  ;;  %v436_v58 = vsel %vm420_vm0, 0.0, %v1249_v13  ;;  %vm841_vm0 = vcmask 556032  }
 0x1d0   :  { %v530_v42 = vadd.f32 %v1306_v50, %v480_v39  ;;  %v634_v45 = vpop.permute.xlu0 %633  ;;  %v452_v49 = vpop.permute.xlu1 %451  ;;  %vm823_vm2 = vcmp.eq.s32.totalorder %v1395_v22, 1 }
 0x1d1   :  { %v463_v4 = vsel %vm461_vm5, %v450_v34, %v452_v49  ;;  %v1390_v34 = vrot.slane %v813_v1, %v540_v19  ;;  %v750_v49 = vsel %vm749_vm13, %v1247_v12, 0.0 }
 0x1d2   :  { %v550_v21 = vsel %vm546_vm8, %v530_v42, 0.0  ;;  %v481_v53 = vadd.f32 %v463_v4, %v1241_v8  ;;  %v640_v8 = vsel %vm637_vm6, %v630_v46, %v632_v25  ;;  %v653_v46 = vsel %vm650_vm7, %v632_v25, 0.0 }
 0x1d3   :  { %v1384_v54 = vadd.f32 %v657_v51, %v550_v21  ;;  %v659_v5 = vadd.f32 %v640_v8, %v1296_v43  ;;  %vm822_vm1 = vcmp.eq.s32.totalorder %v1390_v34, 1  ;;  %v526_v43 = vsel %vm523_vm9, %v1318_v56, 0.0 }
 0x1d4   :  { %v531_v50 = vadd.f32 %v525_v9, %v481_v53  ;;  %v636_v2 = vpop.permute.xlu1 %635  ;;  %v454_v6 = vpop.permute.xlu0 %453  ;;  %v754_v25 = vadd.f32 %v1253_v14, %v708_v35  ;;  %v755_v51 = vadd.f32 %v750_v49, %v696_v30  ;;  %v527_v30 = vsel %vm523_vm9, %v1326_v62, 0.0 }
 0x1d5   :  { %v476_v41 = vsel %vm461_vm5, 0.0, %v454_v6  ;;  %v641_v53 = vsel %vm637_vm6, %v634_v45, %v636_v2 }
 0x1d6   :  { %v551_v48 = vsel %vm547_vm10, %v531_v50, 0.0  ;;  %v482_v24 = vadd.f32 %v476_v41, %v435_v31  ;;  %v697_v31 = vsel %vm695_vm12, %v1328_v59, %v1330_v63 }
 0x1d7   :  { %v1400_v7 = vadd.f32 %v658_v32, %v551_v48 }
 0x1d8   :  { %v532_v19 = vadd.f32 %v513_v33, %v482_v24  ;;  %v771_v15 = vpop.permute.xlu0 %770  ;;  %v456_v36 = vpop.permute.xlu1 %455 }
 0x1d9   :  { %v464_v55 = vsel %vm461_vm5, %v454_v6, %v456_v36  ;;  %v709_v6 = vsel %vm695_vm12, 0.0, %v1328_v59  ;;  %v751_v36 = vsel %vm749_vm13, %v1259_v18, 0.0  ;;  %v698_v18 = vsel %vm695_vm12, %v1332_v0, %v1334_v60 }
 0x1da   :  { %v552_v39 = vsel %vm546_vm8, %v532_v19, 0.0  ;;  %v483_v42 = vadd.f32 %v464_v55, %v1245_v11  ;;  %v660_v11 = vadd.f32 %v653_v46, %v1300_v47  ;;  %v514_v47 = vsel %vm510_vm3, %v1322_v3, %v1326_v62 }
 0x1db   :  { %v1421_v61 = vadd.f32 %v659_v5, %v552_v39  ;;  %v661_v3 = vadd.f32 %v641_v53, %v1310_v52  ;;  %v756_v52 = vadd.f32 %v1263_v20, %v709_v6  ;;  %v752_v55 = vsel %vm749_vm13, %v1273_v27, 0.0 }
 0x1dc   :  { %v533_v4 = vadd.f32 %v526_v43, %v483_v42  ;;  %v773_v26 = vpop.permute.xlu1 %772  ;;  %v458_v21 = vpop.permute.xlu0 %457  ;;  %v711_v43 = vsel %vm695_vm12, 0.0, %v1341_v16 }
 0x1dd   :  { %v787_v12 = vsel %vm786_vm14, %v771_v15, %v773_v26  ;;  %v800_v1 = vsel %vm799_vm15, %v773_v26, 0.0  ;;  %v477_v13 = vsel %vm461_vm5, 0.0, %v458_v21  ;;  %v654_v15 = vsel %vm650_vm7, %v636_v2, 0.0 }
 0x1de   :  { %v553_v56 = vsel %vm547_vm10, %v533_v4, 0.0  ;;  %v804_v9 = vadd.f32 %v787_v12, %v754_v25  ;;  %v805_v50 = vadd.f32 %v800_v1, %v755_v51  ;;  %v484_v14 = vadd.f32 %v477_v13, %v436_v58 }
 0x1df   :  { %v668_v45 = vadd.f32 %v660_v11, %v553_v56  ;;  %v662_v2 = vadd.f32 %v654_v15, %v1316_v57  ;;  %v699_v57 = vsel %vm695_vm12, %v1341_v16, %v1344_v23  ;;  %v753_v16 = vsel %vm749_vm13, %v1287_v37, 0.0 }
 0x1e0   :  { %v824_v32 = vsel %vm822_vm1, %v804_v9, 0.0  ;;  %v825_v41 = vsel %vm823_vm2, %v805_v50, 0.0  ;;  %v534_v8 = vadd.f32 %v514_v47, %v484_v14  ;;  %v460_v48 = vpop.permute.xlu1 %459  ;;  %v775_v24 = vpop.permute.xlu0 %774  ;;  %v760_v23 = vadd.f32 %v1291_v38, %v711_v43 }
 0x1e1   :  { %v832_v33 = vadd.f32 %v824_v32, %v1364_v10  ;;  %v833_v35 = vadd.f32 %v825_v41, %v1373_v40  ;;  %v465_v19 = vsel %vm461_vm5, %v458_v21, %v460_v48  ;;  %v757_v10 = vadd.f32 %v751_v36, %v697_v31 }
 0x1e2   :  { %v554_v59 = vsel %vm546_vm8, %v534_v8, 0.0  ;;  %v485_v63 = vadd.f32 %v465_v19, %v1257_v17  ;;  %v710_v17 = vsel %vm695_vm12, 0.0, %v1332_v0  ;;  %v759_v0 = vadd.f32 %v752_v55, %v698_v18 }
 0x1e3   :  { %840 = vst [vmem:[%s1527_s3] sm:$0xff] %v832_v33  ;;  %842 = vst.msk [vmem:[%s1527_s3 + $0x8] sm:$0xff] %vm841_vm0, %v833_v35  ;;  %v669_v28 = vadd.f32 %v661_v3, %v554_v59  ;;  %v758_v58 = vadd.f32 %v1277_v29, %v710_v17 }
 0x1e4   :  { %v535_v62 = vadd.f32 %v527_v30, %v485_v63  ;;  %v777_v20 = vpop.permute.xlu1 %776  ;;  %v779_v40 = vpop.permute.xlu0 %778 }
 0x1e5   :  { %v788_v46 = vsel %vm786_vm14, %v775_v24, %v777_v20  ;;  %v801_v5 = vsel %vm799_vm15, %v777_v20, 0.0 }
 0x1e6   :  { %v555_v39 = vsel %vm547_vm10, %v535_v62, 0.0  ;;  %v806_v42 = vadd.f32 %v788_v46, %v756_v52  ;;  %v807_v49 = vadd.f32 %v801_v5, %v757_v10 }
 0x1e7   :  { %v670_v60 = vadd.f32 %v662_v2, %v555_v39 }
 0x1e8   :  { %v826_v25 = vsel %vm822_vm1, %v806_v42, 0.0  ;;  %v827_v27 = vsel %vm823_vm2, %v807_v49, 0.0  ;;  %v781_v44 = vpop.permute.xlu1 %780  ;;  %v783_v53 = vpop.permute.xlu0 %782 }
 0x1e9   :  { %v834_v51 = vadd.f32 %v826_v25, %v1384_v54  ;;  %v835_v29 = vadd.f32 %v827_v27, %v1400_v7  ;;  %v789_v11 = vsel %vm786_vm14, %v779_v40, %v781_v44  ;;  %v802_v4 = vsel %vm799_vm15, %v781_v44, 0.0 }
 0x1ea   :  { %v808_v26 = vadd.f32 %v789_v11, %v758_v58  ;;  %v809_v21 = vadd.f32 %v802_v4, %v759_v0  ;;  %v761_v54 = vadd.f32 %v753_v16, %v699_v57 }
 0x1eb   :  { %843 = vst [vmem:[%s1527_s3 + $0x10] sm:$0xff] %v834_v51  ;;  %844 = vst.msk [vmem:[%s1527_s3 + $0x18] sm:$0xff] %vm841_vm0, %v835_v29 }
 0x1ec   :  { %v828_v7 = vsel %vm822_vm1, %v808_v26, 0.0  ;;  %v829_v12 = vsel %vm823_vm2, %v809_v21, 0.0  ;;  %v785_v1 = vpop.permute.xlu1 %784 }
 0x1ed   :  { %v836_v37 = vadd.f32 %v828_v7, %v1421_v61  ;;  %v837_v13 = vadd.f32 %v829_v12, %v668_v45  ;;  %v790_v56 = vsel %vm786_vm14, %v783_v53, %v785_v1  ;;  %v803_v9 = vsel %vm799_vm15, %v785_v1, 0.0 }
 0x1ee   :  { %v810_v50 = vadd.f32 %v790_v56, %v760_v23  ;;  %v811_v14 = vadd.f32 %v803_v9, %v761_v54 }
 0x1ef   :  { %845 = vst [vmem:[%s1527_s3 + $0x20] sm:$0xff] %v836_v37  ;;  %846 = vst.msk [vmem:[%s1527_s3 + $0x28] sm:$0xff] %vm841_vm0, %v837_v13 }
 0x1f0   :  { %v830_v38 = vsel %vm822_vm1, %v810_v50, 0.0  ;;  %v831_v61 = vsel %vm823_vm2, %v811_v14, 0.0 }
 0x1f1   :  { %v838_v47 = vadd.f32 %v830_v38, %v669_v28  ;;  %v839_v6 = vadd.f32 %v831_v61, %v670_v60 }
 0x1f3   :  { %847 = vst [vmem:[%s1527_s3 + $0x30] sm:$0xff] %v838_v47  ;;  %848 = vst.msk [vmem:[%s1527_s3 + $0x38] sm:$0xff] %vm841_vm0, %v839_v6 }

</bundles_post_ra>
